<compile_context>
chip_gen: v7x
topology: tpu7x:2x2x1
jax: 0.10.0
libtpu: 0.0.40
codegen_flags: <defaults>
</compile_context>

<pallas_src>
import numpy as np
import jax
import jax.numpy as jnp
from jax.experimental import pallas as pl
from jax.experimental.pallas import tpu as pltpu


def _make_predictor_kernel(len_synonyms, scale_base_logits, compute_dtype):
    """Builds the kernel with group layout + scale baked in at trace time."""
    len_synonyms = tuple(int(n) for n in len_synonyms)
    scale = float(scale_base_logits)

    def kernel(img_ref, txt_ref, scores_ref, idx_ref):
        # img_ref: (TB, D) f32 VMEM        txt_ref: (T, D) bf16 VMEM (resident)
        # scores_ref: (TB, G) f32 VMEM     idx_ref: (TB, G) i32 VMEM
        # In-kernel f32->bf16 cast of the image tile (free VPU work under
        # MXU/DMA slack; avoids a separate full-HBM-pass cast in XLA).
        img = img_ref[...].astype(compute_dtype)
        # MXU: contract D on both operands -> (TB, T) f32 logits.
        logits = jax.lax.dot_general(
            img, txt_ref[...],
            dimension_numbers=(((1,), (1,)), ((), ())),
            preferred_element_type=jnp.float32)

        # Non-positive scale is not monotone -> must scale before the max.
        if scale != 1.0 and scale <= 0.0:
            logits = logits * jnp.float32(scale)

        # Static contiguous synonym groups: per-group max + first-index argmax.
        iota_cache = {}
        maxs, idxs = [], []
        s = 0
        for n in len_synonyms:              # static python loop over groups
            grp = logits[:, s:s + n]                              # (TB, n)
            xmax = jnp.max(grp, axis=-1, keepdims=True)           # (TB, 1)
            if n == 1:
                xidx = jnp.zeros(xmax.shape, jnp.int32)
            else:
                rel = iota_cache.get(n)
                if rel is None:                                   # memoized
                    rel = jax.lax.broadcasted_iota(
                        jnp.int32, (grp.shape[0], n), 1)
                    iota_cache[n] = rel
                # First index achieving the max (numpy/torch-CPU tie
                # semantics), already relative to the group's start column.
                xidx = jnp.min(jnp.where(grp == xmax, rel, n),
                               axis=-1, keepdims=True)            # (TB, 1)
            maxs.append(xmax)
            idxs.append(xidx)
            s += n

        scores = jnp.concatenate(maxs, axis=1)                    # (TB, G)
        if scale != 1.0 and scale > 0.0:
            # Positive scale is monotone: fold it into the (TB, G) maxima
            # instead of a full (TB, T) multiply per grid step.
            scores = scores * jnp.float32(scale)
        scores_ref[...] = scores
        idx_ref[...] = jnp.concatenate(idxs, axis=1).astype(jnp.int32)

    return kernel


def _vmem_need_bytes(tb, D, T, G, txt_bufs):
    img = 2 * tb * D * 4                       # double-buffered f32 image tile
    txt = txt_bufs * T * D * 2                 # resident bf16 text
    outs = 2 * 2 * tb * G * 4                  # double-buffered f32 + i32 outs
    tmp = 3 * tb * T * 4                       # logits + compare/select temps
    return img + txt + outs + tmp + (2 << 20)  # Mosaic internal headroom


def predictor_forward(image_features, text_features, len_synonyms,
                      scale_base_logits=1.0, *,
                      compute_dtype=jnp.bfloat16, block_b=512):
    """image_features: (B, D) f32, text_features: (T, D) f32."""
    img = jnp.asarray(image_features)
    txt = jnp.asarray(text_features)
    B, D = img.shape
    T, Dt = txt.shape
    G = len(len_synonyms)
    assert Dt == D, "feature dims must match"
    assert all(int(n) > 0 for n in len_synonyms), "empty synonym group"
    assert sum(len_synonyms) == T, "len_synonyms must partition the text axis"
    # Note: the module's `single_split` case (G == T) implies all groups have
    # length 1, which this path already handles identically.

    # Text is small + VMEM-resident: cast once host-side.  The image stream
    # stays f32 and is cast inside the kernel.
    txt_c = txt.astype(compute_dtype)

    # Generation-aware VMEM budget (v5e/v6e: 128 MiB, v7x: 64 MiB per TC).
    try:
        vmem_cap = int(pltpu.get_tpu_info().vmem_capacity_bytes)
    except Exception:
        vmem_cap = 64 << 20                     # conservative (v7x per-TC size)
    budget = int(0.80 * vmem_cap)

    # --- batch tile selection -------------------------------------------------
    if B <= min(block_b, 128):
        tb = B                                  # full-dim block is always legal
    else:
        tb = min(block_b, B)
        tb = max(128, (tb // 128) * 128)        # 128-aligned rows (v5e MXU)
        while tb > 128 and _vmem_need_bytes(tb, D, T, G, 1) > budget:
            tb -= 128
    # v7x megacore: guarantee >= 2 grid steps so both TensorCores get work.
    if pl.cdiv(B, tb) == 1 and B >= 16:
        half = (B + 1) // 2
        if half >= 128:
            tb = ((half + 127) // 128) * 128
        else:
            tb = ((half + 7) // 8) * 8
    grid = (pl.cdiv(B, tb),)

    need = _vmem_need_bytes(tb, D, T, G, 1)
    vmem_limit = int(min(max(need, 8 << 20), int(0.85 * vmem_cap)))

    cost = pl.CostEstimate(
        flops=2 * B * T * D,
        transcendentals=0,
        bytes_accessed=B * D * 4 + T * D * 2 + 2 * B * G * 4)

    kernel = _make_predictor_kernel(len_synonyms, scale_base_logits,
                                    compute_dtype)

    def _run(single_buffer_text):
        if single_buffer_text:
            # Constant index map -> no per-step re-DMA; single-buffering halves
            # the resident text VMEM footprint.
            txt_spec = pl.BlockSpec((T, D), lambda i: (0, 0),
                                    pipeline_mode=pl.Buffered(1))
        else:
            txt_spec = pl.BlockSpec((T, D), lambda i: (0, 0))
        return pl.pallas_call(
            kernel,
            out_shape=(jax.ShapeDtypeStruct((B, G), jnp.float32),
                       jax.ShapeDtypeStruct((B, G), jnp.int32)),
            grid=grid,
            in_specs=[
                pl.BlockSpec((tb, D), lambda i: (i, 0)),   # image tile, pipelined
                txt_spec,                                  # text, VMEM-resident
            ],
            out_specs=(pl.BlockSpec((tb, G), lambda i: (i, 0)),
                       pl.BlockSpec((tb, G), lambda i: (i, 0))),
            compiler_params=pltpu.CompilerParams(
                dimension_semantics=("parallel",),
                vmem_limit_bytes=vmem_limit),
            cost_estimate=cost,
        )(img, txt_c)

    try:
        scores, idx_attrs = _run(True)
    except Exception:
        # Fallback for jax versions where Buffered(1) on a TPU input block is
        # not supported; semantics are identical, only VMEM footprint differs.
        scores, idx_attrs = _run(False)

    return {'image_features': image_features,
            'scores': scores,
            'idx_attrs': idx_attrs}


def _reference(image_features, text_features, len_synonyms, scale):
    logits = scale * image_features @ text_features.T
    maxs, idxs = [], []
    s = 0
    for n in len_synonyms:
        grp = logits[:, s:s + n]
        maxs.append(grp.max(axis=1))
        idxs.append(grp.argmax(axis=1))
        s += n
    return np.stack(maxs, axis=1), np.stack(idxs, axis=1)


if __name__ == "__main__":
    key = jax.random.PRNGKey(0)
    B, D = 16, 32                     # batch of images, CLIP embedding dim
    len_synonyms = [3, 2, 2, 1]       # 4 attributes, 8 synonym prompts total
    T = sum(len_synonyms)
    scale = 2.5

    k1, k2 = jax.random.split(key)
    img = jax.random.normal(k1, (B, D), jnp.float32)
    txt = jax.random.normal(k2, (T, D), jnp.float32)
    # CLIP-style L2-normalized features (done by the backbone, not the kernel)
    img = img / jnp.linalg.norm(img, axis=-1, keepdims=True)
    txt = txt / jnp.linalg.norm(txt, axis=-1, keepdims=True)

    # With B=16 the megacore rule splits the batch into 2 grid steps, so the
    # small test also exercises the batch grid / pipelining path.
    out = predictor_forward(img, txt, len_synonyms, scale_base_logits=scale)
    jax.block_until_ready(out['scores'])
    jax.block_until_ready(out['idx_attrs'])

    # Reference computed on the same bf16-rounded operands (f32 math,
    # scale applied before the max — equal values/indices for scale > 0).
    img_r = np.asarray(img.astype(jnp.bfloat16).astype(jnp.float32))
    txt_r = np.asarray(txt.astype(jnp.bfloat16).astype(jnp.float32))
    ref_scores, ref_idx = _reference(img_r, txt_r, len_synonyms, scale)

    np.testing.assert_allclose(np.asarray(out['scores']), ref_scores,
                               rtol=2e-5, atol=2e-5)
    np.testing.assert_array_equal(np.asarray(out['idx_attrs']), ref_idx)

    print("KERNEL_OK")
</pallas_src>

<mosaic_0001>
module attributes {stable_mosaic.version = 11 : i64} {
  func.func @kernel(%arg0: i32, %arg1: memref<8x32xf32, #tpu.memory_space<vmem>>, %arg2: memref<8x32xbf16, #tpu.memory_space<vmem>>, %arg3: memref<8x4xf32, #tpu.memory_space<vmem>>, %arg4: memref<8x4xi32, #tpu.memory_space<vmem>>) attributes {dimension_semantics = [#tpu.dimension_semantics<parallel>], iteration_bounds = array<i64: 2>, scalar_prefetch = 0 : i64, scratch_operands = 0 : i64, tpu.core_type = #tpu.core_type<tc>, window_params = [{transform_indices = @transform_0, window_bounds = array<i64: 8, 32>}, {pipeline_mode = #tpu.pipeline_mode<synchronous>, transform_indices = @transform_1, window_bounds = array<i64: 8, 32>}, {transform_indices = @transform_2, window_bounds = array<i64: 8, 4>}, {transform_indices = @transform_3, window_bounds = array<i64: 8, 4>}]} {
    %c0 = arith.constant 0 : index
    %c0_0 = arith.constant 0 : index
    %0 = vector.load %arg1[%c0, %c0_0] : memref<8x32xf32, #tpu.memory_space<vmem>>, vector<8x32xf32>
    %1 = arith.truncf %0 : vector<8x32xf32> to vector<8x32xbf16>
    %c0_1 = arith.constant 0 : index
    %c0_2 = arith.constant 0 : index
    %2 = vector.load %arg2[%c0_1, %c0_2] : memref<8x32xbf16, #tpu.memory_space<vmem>>, vector<8x32xbf16>
    %cst = arith.constant dense<0.000000e+00> : vector<8x8xf32>
    %3 = tpu.matmul %1, %2, %cst {dimension_numbers = #tpu.dot_dimension_numbers<[1], [1], [0], [0], [0, 0, 1, 0], [], []>} : vector<8x32xbf16>, vector<8x32xbf16>, vector<8x8xf32> -> vector<8x8xf32>
    %4 = vector.extract_strided_slice %3 {offsets = [0, 0], sizes = [8, 3], strides = [1, 1]} : vector<8x8xf32> to vector<8x3xf32>
    %cst_3 = arith.constant dense<0xFF800000> : vector<8xf32>
    %5 = vector.multi_reduction <maximumf>, %4, %cst_3 [1] : vector<8x3xf32> to vector<8xf32>
    %6 = vector.shape_cast %5 : vector<8xf32> to vector<8x1xf32>
    %7 = tpu.iota {dimensions = array<i32: 1>} : vector<8x3xi32>
    %8 = vector.broadcast %6 : vector<8x1xf32> to vector<8x3xf32>
    %9 = arith.cmpf oeq, %4, %8 : vector<8x3xf32>
    %c3_i32 = arith.constant 3 : i32
    %10 = vector.broadcast %c3_i32 : i32 to vector<8x3xi32>
    %11 = arith.select %9, %7, %10 : vector<8x3xi1>, vector<8x3xi32>
    %cst_4 = arith.constant dense<2147483647> : vector<8xi32>
    %12 = vector.multi_reduction <minsi>, %11, %cst_4 [1] : vector<8x3xi32> to vector<8xi32>
    %13 = vector.shape_cast %12 : vector<8xi32> to vector<8x1xi32>
    %14 = vector.extract_strided_slice %3 {offsets = [0, 3], sizes = [8, 2], strides = [1, 1]} : vector<8x8xf32> to vector<8x2xf32>
    %cst_5 = arith.constant dense<0xFF800000> : vector<8xf32>
    %15 = vector.multi_reduction <maximumf>, %14, %cst_5 [1] : vector<8x2xf32> to vector<8xf32>
    %16 = vector.shape_cast %15 : vector<8xf32> to vector<8x1xf32>
    %17 = tpu.iota {dimensions = array<i32: 1>} : vector<8x2xi32>
    %18 = vector.broadcast %16 : vector<8x1xf32> to vector<8x2xf32>
    %19 = arith.cmpf oeq, %14, %18 : vector<8x2xf32>
    %c2_i32 = arith.constant 2 : i32
    %20 = vector.broadcast %c2_i32 : i32 to vector<8x2xi32>
    %21 = arith.select %19, %17, %20 : vector<8x2xi1>, vector<8x2xi32>
    %cst_6 = arith.constant dense<2147483647> : vector<8xi32>
    %22 = vector.multi_reduction <minsi>, %21, %cst_6 [1] : vector<8x2xi32> to vector<8xi32>
    %23 = vector.shape_cast %22 : vector<8xi32> to vector<8x1xi32>
    %24 = vector.extract_strided_slice %3 {offsets = [0, 5], sizes = [8, 2], strides = [1, 1]} : vector<8x8xf32> to vector<8x2xf32>
    %cst_7 = arith.constant dense<0xFF800000> : vector<8xf32>
    %25 = vector.multi_reduction <maximumf>, %24, %cst_7 [1] : vector<8x2xf32> to vector<8xf32>
    %26 = vector.shape_cast %25 : vector<8xf32> to vector<8x1xf32>
    %27 = vector.broadcast %26 : vector<8x1xf32> to vector<8x2xf32>
    %28 = arith.cmpf oeq, %24, %27 : vector<8x2xf32>
    %c2_i32_8 = arith.constant 2 : i32
    %29 = vector.broadcast %c2_i32_8 : i32 to vector<8x2xi32>
    %30 = arith.select %28, %17, %29 : vector<8x2xi1>, vector<8x2xi32>
    %cst_9 = arith.constant dense<2147483647> : vector<8xi32>
    %31 = vector.multi_reduction <minsi>, %30, %cst_9 [1] : vector<8x2xi32> to vector<8xi32>
    %32 = vector.shape_cast %31 : vector<8xi32> to vector<8x1xi32>
    %33 = vector.extract_strided_slice %3 {offsets = [0, 7], sizes = [8, 1], strides = [1, 1]} : vector<8x8xf32> to vector<8x1xf32>
    %cst_10 = arith.constant dense<0xFF800000> : vector<8xf32>
    %34 = vector.multi_reduction <maximumf>, %33, %cst_10 [1] : vector<8x1xf32> to vector<8xf32>
    %35 = vector.shape_cast %34 : vector<8xf32> to vector<8x1xf32>
    %c0_i32 = arith.constant 0 : i32
    %36 = vector.broadcast %c0_i32 : i32 to vector<8x1xi32>
    %37 = tpu.concatenate %6, %16, %26, %35 in 1 : vector<8x1xf32>, vector<8x1xf32>, vector<8x1xf32>, vector<8x1xf32> -> vector<8x4xf32>
    %cst_11 = arith.constant 2.500000e+00 : f32
    %38 = vector.broadcast %cst_11 : f32 to vector<8x4xf32>
    %39 = arith.mulf %37, %38 : vector<8x4xf32>
    %c0_12 = arith.constant 0 : index
    %c0_13 = arith.constant 0 : index
    %40 = vector.load %arg3[%c0_12, %c0_13] : memref<8x4xf32, #tpu.memory_space<vmem>>, vector<8x4xf32>
    tpu.vector_store %arg3[%c0_12, %c0_13], %39 {strides = array<i32>} : memref<8x4xf32, #tpu.memory_space<vmem>>, vector<8x4xf32>,
    %41 = tpu.concatenate %13, %23, %32, %36 in 1 : vector<8x1xi32>, vector<8x1xi32>, vector<8x1xi32>, vector<8x1xi32> -> vector<8x4xi32>
    %c0_14 = arith.constant 0 : index
    %c0_15 = arith.constant 0 : index
    %42 = vector.load %arg4[%c0_14, %c0_15] : memref<8x4xi32, #tpu.memory_space<vmem>>, vector<8x4xi32>
    tpu.vector_store %arg4[%c0_14, %c0_15], %41 {strides = array<i32>} : memref<8x4xi32, #tpu.memory_space<vmem>>, vector<8x4xi32>,
    return
  }
  func.func @transform_0(%arg0: i32) -> (i32, i32) {
    %c0_i32 = arith.constant 0 : i32
    %c0_i32_0 = arith.constant 0 : i32
    return %arg0, %c0_i32 : i32, i32
  }
  func.func @transform_1(%arg0: i32) -> (i32, i32) {
    %c0_i32 = arith.constant 0 : i32
    %c0_i32_0 = arith.constant 0 : i32
    %c0_i32_1 = arith.constant 0 : i32
    return %c0_i32, %c0_i32_0 : i32, i32
  }
  func.func @transform_2(%arg0: i32) -> (i32, i32) {
    %c0_i32 = arith.constant 0 : i32
    %c0_i32_0 = arith.constant 0 : i32
    return %arg0, %c0_i32 : i32, i32
  }
  func.func @transform_3(%arg0: i32) -> (i32, i32) {
    %c0_i32 = arith.constant 0 : i32
    %c0_i32_0 = arith.constant 0 : i32
    return %arg0, %c0_i32 : i32, i32
  }
}

module attributes {stable_mosaic.version = 11 : i64} {
  func.func @kernel(%arg0: i32, %arg1: memref<8x32xf32, #tpu.memory_space<vmem>>, %arg2: memref<8x32xbf16, #tpu.memory_space<vmem>>, %arg3: memref<8x4xf32, #tpu.memory_space<vmem>>, %arg4: memref<8x4xi32, #tpu.memory_space<vmem>>) attributes {dimension_semantics = [#tpu.dimension_semantics<parallel>], iteration_bounds = array<i64: 2>, scalar_prefetch = 0 : i64, scratch_operands = 0 : i64, tpu.core_type = #tpu.core_type<tc>, window_params = [{transform_indices = @transform_0, window_bounds = array<i64: 8, 32>}, {pipeline_mode = #tpu.pipeline_mode<synchronous>, transform_indices = @transform_1, window_bounds = array<i64: 8, 32>}, {transform_indices = @transform_2, window_bounds = array<i64: 8, 4>}, {transform_indices = @transform_3, window_bounds = array<i64: 8, 4>}]} {
    %c0 = arith.constant 0 : index
    %c0_0 = arith.constant 0 : index
    %0 = vector.load %arg1[%c0, %c0_0] : memref<8x32xf32, #tpu.memory_space<vmem>>, vector<8x32xf32>
    %1 = arith.truncf %0 : vector<8x32xf32> to vector<8x32xbf16>
    %c0_1 = arith.constant 0 : index
    %c0_2 = arith.constant 0 : index
    %2 = vector.load %arg2[%c0_1, %c0_2] : memref<8x32xbf16, #tpu.memory_space<vmem>>, vector<8x32xbf16>
    %cst = arith.constant dense<0.000000e+00> : vector<8x8xf32>
    %3 = tpu.matmul %1, %2, %cst {dimension_numbers = #tpu.dot_dimension_numbers<[1], [1], [0], [0], [0, 0, 1, 0], [], []>} : vector<8x32xbf16>, vector<8x32xbf16>, vector<8x8xf32> -> vector<8x8xf32>
    %4 = vector.extract_strided_slice %3 {offsets = [0, 0], sizes = [8, 3], strides = [1, 1]} : vector<8x8xf32> to vector<8x3xf32>
    %cst_3 = arith.constant dense<0xFF800000> : vector<8xf32>
    %5 = vector.multi_reduction <maximumf>, %4, %cst_3 [1] : vector<8x3xf32> to vector<8xf32>
    %6 = vector.shape_cast %5 : vector<8xf32> to vector<8x1xf32>
    %7 = tpu.iota {dimensions = array<i32: 1>} : vector<8x3xi32>
    %8 = vector.broadcast %6 : vector<8x1xf32> to vector<8x3xf32>
    %9 = arith.cmpf oeq, %4, %8 : vector<8x3xf32>
    %c3_i32 = arith.constant 3 : i32
    %10 = vector.broadcast %c3_i32 : i32 to vector<8x3xi32>
    %11 = arith.select %9, %7, %10 : vector<8x3xi1>, vector<8x3xi32>
    %cst_4 = arith.constant dense<2147483647> : vector<8xi32>
    %12 = vector.multi_reduction <minsi>, %11, %cst_4 [1] : vector<8x3xi32> to vector<8xi32>
    %13 = vector.shape_cast %12 : vector<8xi32> to vector<8x1xi32>
    %14 = vector.extract_strided_slice %3 {offsets = [0, 3], sizes = [8, 2], strides = [1, 1]} : vector<8x8xf32> to vector<8x2xf32>
    %cst_5 = arith.constant dense<0xFF800000> : vector<8xf32>
    %15 = vector.multi_reduction <maximumf>, %14, %cst_5 [1] : vector<8x2xf32> to vector<8xf32>
    %16 = vector.shape_cast %15 : vector<8xf32> to vector<8x1xf32>
    %17 = tpu.iota {dimensions = array<i32: 1>} : vector<8x2xi32>
    %18 = vector.broadcast %16 : vector<8x1xf32> to vector<8x2xf32>
    %19 = arith.cmpf oeq, %14, %18 : vector<8x2xf32>
    %c2_i32 = arith.constant 2 : i32
    %20 = vector.broadcast %c2_i32 : i32 to vector<8x2xi32>
    %21 = arith.select %19, %17, %20 : vector<8x2xi1>, vector<8x2xi32>
    %cst_6 = arith.constant dense<2147483647> : vector<8xi32>
    %22 = vector.multi_reduction <minsi>, %21, %cst_6 [1] : vector<8x2xi32> to vector<8xi32>
    %23 = vector.shape_cast %22 : vector<8xi32> to vector<8x1xi32>
    %24 = vector.extract_strided_slice %3 {offsets = [0, 5], sizes = [8, 2], strides = [1, 1]} : vector<8x8xf32> to vector<8x2xf32>
    %cst_7 = arith.constant dense<0xFF800000> : vector<8xf32>
    %25 = vector.multi_reduction <maximumf>, %24, %cst_7 [1] : vector<8x2xf32> to vector<8xf32>
    %26 = vector.shape_cast %25 : vector<8xf32> to vector<8x1xf32>
    %27 = vector.broadcast %26 : vector<8x1xf32> to vector<8x2xf32>
    %28 = arith.cmpf oeq, %24, %27 : vector<8x2xf32>
    %c2_i32_8 = arith.constant 2 : i32
    %29 = vector.broadcast %c2_i32_8 : i32 to vector<8x2xi32>
    %30 = arith.select %28, %17, %29 : vector<8x2xi1>, vector<8x2xi32>
    %cst_9 = arith.constant dense<2147483647> : vector<8xi32>
    %31 = vector.multi_reduction <minsi>, %30, %cst_9 [1] : vector<8x2xi32> to vector<8xi32>
    %32 = vector.shape_cast %31 : vector<8xi32> to vector<8x1xi32>
    %33 = vector.extract_strided_slice %3 {offsets = [0, 7], sizes = [8, 1], strides = [1, 1]} : vector<8x8xf32> to vector<8x1xf32>
    %cst_10 = arith.constant dense<0xFF800000> : vector<8xf32>
    %34 = vector.multi_reduction <maximumf>, %33, %cst_10 [1] : vector<8x1xf32> to vector<8xf32>
    %35 = vector.shape_cast %34 : vector<8xf32> to vector<8x1xf32>
    %c0_i32 = arith.constant 0 : i32
    %36 = vector.broadcast %c0_i32 : i32 to vector<8x1xi32>
    %37 = tpu.concatenate %6, %16, %26, %35 in 1 : vector<8x1xf32>, vector<8x1xf32>, vector<8x1xf32>, vector<8x1xf32> -> vector<8x4xf32>
    %cst_11 = arith.constant 2.500000e+00 : f32
    %38 = vector.broadcast %cst_11 : f32 to vector<8x4xf32>
    %39 = arith.mulf %37, %38 : vector<8x4xf32>
    %c0_12 = arith.constant 0 : index
    %c0_13 = arith.constant 0 : index
    %40 = vector.load %arg3[%c0_12, %c0_13] : memref<8x4xf32, #tpu.memory_space<vmem>>, vector<8x4xf32>
    tpu.vector_store %arg3[%c0_12, %c0_13], %39 {strides = array<i32>} : memref<8x4xf32, #tpu.memory_space<vmem>>, vector<8x4xf32>,
    %41 = tpu.concatenate %13, %23, %32, %36 in 1 : vector<8x1xi32>, vector<8x1xi32>, vector<8x1xi32>, vector<8x1xi32> -> vector<8x4xi32>
    %c0_14 = arith.constant 0 : index
    %c0_15 = arith.constant 0 : index
    %42 = vector.load %arg4[%c0_14, %c0_15] : memref<8x4xi32, #tpu.memory_space<vmem>>, vector<8x4xi32>
    tpu.vector_store %arg4[%c0_14, %c0_15], %41 {strides = array<i32>} : memref<8x4xi32, #tpu.memory_space<vmem>>, vector<8x4xi32>,
    return
  }
  func.func @transform_0(%arg0: i32) -> (i32, i32) {
    %c0_i32 = arith.constant 0 : i32
    %c0_i32_0 = arith.constant 0 : i32
    return %arg0, %c0_i32 : i32, i32
  }
  func.func @transform_1(%arg0: i32) -> (i32, i32) {
    %c0_i32 = arith.constant 0 : i32
    %c0_i32_0 = arith.constant 0 : i32
    %c0_i32_1 = arith.constant 0 : i32
    return %c0_i32, %c0_i32_0 : i32, i32
  }
  func.func @transform_2(%arg0: i32) -> (i32, i32) {
    %c0_i32 = arith.constant 0 : i32
    %c0_i32_0 = arith.constant 0 : i32
    return %arg0, %c0_i32 : i32, i32
  }
  func.func @transform_3(%arg0: i32) -> (i32, i32) {
    %c0_i32 = arith.constant 0 : i32
    %c0_i32_0 = arith.constant 0 : i32
    return %arg0, %c0_i32 : i32, i32
  }
}

</mosaic_0001>

<bundles_post_ra>
// kernel: tpu_custom_call.1
= control target key start
LH: loop header
LB: loop body
LE: loop exit
PB: predicated region body
PF: predicated region fallthrough
CT: control target
= control target key end

     0   :  { %9 = vsyncpa [#allocation3], 0  ;;  %s817_s0 = inlined_call_operand.hbm [shape: f32[16,32], index: 0, kind: input, shape index: {}]   ;;  %s818_s1 = inlined_call_operand.hbm [shape: bf16[8,32], index: 1, kind: input, shape index: {}]   ;;  %s819_s2 = inlined_call_operand.vmem [shape: f32[16,4], index: 2, kind: output, shape index: {0}]   ;;  %s820_s3 = inlined_call_operand.vmem [shape: s32[16,4], index: 3, kind: output, shape index: {1}]  }
   0x1   :  { %11 = vsyncpa [#allocation3 + $0x1], 0 }
   0x2   :  { %12 = vsyncpa [#allocation5], 0  ;;  %s654_s12 = smov 0   ;;  %s656_s13 = smov 0  }
   0x3   :  { %s658_s14 = smov 0   ;;  %s660_s15 = smov 0  }
   0x4 LB: > { %s673_s16 = sadd.s32 4294967295, %s625_s15   ;;  %p38_p0 = scmp.ne.s32.totalorder %s617_s13, %s613_s12  ;;  %s625_s15 = sphi %s660_s15, %s838_s15   ;;  %s621_s14 = sphi %s658_s14, %s837_s14   ;;  %s617_s13 = sphi %s656_s13, %s836_s13   ;;  %s613_s12 = sphi %s654_s12, %s835_s12  }
   0x5   : > { %p821_p1 = scmp.eq.s32.totalorder %s673_s16, 0  ;;  %p453_p2 = scmp.ge.s32.totalorder %s625_s15, 1 }
   0x6   : > { %p122_p3 = scmp.lt.s32.totalorder %s625_s15, 3  ;;  %s627_s19 = smov [#allocation4]  }
   0x7   : > { %p681_p4 = por %p821_p1, %p38_p0  ;;  %s135_s20 = sshll.u32 %s627_s19, 4  ;;  %s136_s20 = int_to_ptr.vmem [resolvable:$true] %s135_s20 }
   0x8   : > { %p685_p5 = pnand %p453_p2, %p122_p3  ;;  %s692_s21 = sadd.s32 1, %s625_s15  }
   0x9   : > { %s824_s17 = scalar_select %p681_p4, 1, 0 }
   0xa   : > { %s825_s18 = scalar_select %p685_p5, 1, 0 }
   0xb   : > { %p480_p6 = pneg %p685_p5  ;;  %s22_s23 = ssub.s32 %s625_s15, %s692_s21 }
   0xc   : > { %p702_p8 = scmp.eq.s32.totalorder %s22_s23, 0  ;;  %s25_s25 = sadd.s32 1, %s621_s14 }
   0xd   : > { %p696_p7 = pnand %p480_p6, %p821_p1  ;;  %s529_s28 = scalar_lea.hbm %s818_s1, 64 }
   0xe   : > { %s827_s24 = scalar_select %p702_p8, 1, 0 }
   0xf   : > { %p530_p10 = scmp.ne.s32.totalorder %s818_s1, %s529_s28  ;;  %p531_p11 = pneg %p696_p7 }
  0x10   : > { %p536_p0 = scmp.lt.u32.totalorder %s529_s28, %s818_s1 }
  0x11   : > { %p532_p12 = pnand %p531_p11, %p530_p10 }
  0x13   : > { %p533_p13 = pneg %p532_p12 }
  0x15   : > { %p538_p2 = pnand %p536_p0, %p533_p13 }
  0x17   : > { %541 = shalt.err (!%p538_p2)
}
  0x18   : > { %s542_s6 = scalar_lea.vmem %s136_s20, 64  ;;  %p550_p9 = scmp.lt.s32.totalorder %s136_s20, %s136_s20 }
  0x19   : > { %p543_p3 = scmp.ne.s32.totalorder %s136_s20, %s542_s6  ;;  %p551_p4 = scmp.lt.s32.totalorder %s542_s6, %s542_s6 }
  0x1b   : > { %p545_p6 = pnand %p543_p3, %p531_p11  ;;  %p552_p5 = por %p551_p4, %p550_p9 }
  0x1d   : > { %p546_p1 = pneg %p545_p6 }
  0x1f   : > { %p553_p8 = pnand %p552_p5, %p546_p1 }
  0x21   : > { %556 = shalt.err (!%p553_p8)
}
  0x22   : > { %483 = dma.hbm_to_vmem [thread:$0]  (!%p696_p7), %s818_s1, 64, %s136_s20, [#allocation5]  }
  0x23   : > { %p828_p10 = scmp.ne.s32.totalorder %s827_s24, 0  ;;  %p33_p4 = scmp.eq.s32.totalorder %s625_s15, 0 }
  0x24   : > { %p489_p1 = scmp.lt.s32.totalorder %s625_s15, 2  ;;  %s146_s10 = sand.u32 1, %s621_s14  }
  0x25   : > { %s728_s9 = scalar_select %p828_p10, %s621_s14, %s25_s25  }
  0x26   : > { %s457_s11 = sshll.u32 %s625_s15, 7  ;;  %p829_p5 = scmp.ne.s32.totalorder %s621_s14, %s617_s13 }
  0x27   : > { %s456_s12 = sshll.u32 %s146_s10, 3  ;;  %s740_s23 = scalar_lea.hbm %s817_s0, %s457_s11 }
  0x28   : > { %p34_p8 = por %p33_p4, %p829_p5  ;;  %s150_s24 = scalar_lea.vmem [#allocation2], %s456_s12 }
  0x29   : > { %s157_s15 = sshll.u32 %s150_s24, 4  ;;  %s147_s25 = scalar_lea.sflag [#allocation3], %s146_s10  ;;  %s746_s15 = int_to_ptr.vmem [resolvable:$true] %s157_s15 }
  0x2a   : > { %p742_p7 = pnand %p489_p1, %p34_p8  ;;  %s557_s26 = scalar_lea.hbm %s740_s23, 128 }
  0x2b   : > { %p558_p9 = scmp.ne.s32.totalorder %s740_s23, %s557_s26  ;;  %s562_s29 = scalar_lea.hbm %s817_s0, 256 }
  0x2c   : > { %p559_p11 = pneg %p742_p7  ;;  %p563_p0 = scmp.lt.u32.totalorder %s740_s23, %s817_s0 }
  0x2d   : > { %p564_p2 = scmp.lt.u32.totalorder %s562_s29, %s557_s26  ;;  %p566_p6 = scmp.lt.u32.totalorder %s557_s26, %s740_s23 }
  0x2e   : > { %p560_p12 = pnand %p559_p11, %p558_p9 }
  0x2f   : > { %p565_p3 = por %p564_p2, %p563_p0 }
  0x30   : > { %p561_p13 = pneg %p560_p12 }
  0x31   : > { %p567_p10 = por %p566_p6, %p565_p3 }
  0x33   : > { %p568_p4 = pnand %p567_p10, %p561_p13 }
  0x35   : > { %571 = shalt.err (!%p568_p4)
}
  0x36   : > { %s572_s5 = scalar_lea.vmem %s746_s15, 128  ;;  %s628_s6 = smov [#allocation2]  }
  0x37   : > { %p573_p1 = scmp.ne.s32.totalorder %s746_s15, %s572_s5  ;;  %s577_s7 = sshll.u32 %s628_s6, 4  ;;  %s578_s7 = int_to_ptr.vmem [resolvable:$false] %s577_s7 }
  0x38   : > { %s579_s8 = scalar_lea.vmem %s578_s7, 256  ;;  %p580_p9 = scmp.lt.s32.totalorder %s746_s15, %s578_s7 }
  0x39   : > { %p575_p5 = pnand %p573_p1, %p559_p11  ;;  %p581_p12 = scmp.lt.s32.totalorder %s579_s8, %s572_s5 }
  0x3b   : > { %p576_p8 = pneg %p575_p5  ;;  %p582_p0 = por %p581_p12, %p580_p9 }
  0x3d   : > { %p583_p2 = pnand %p582_p0, %p576_p8 }
  0x3f   : > { %586 = shalt.err (!%p583_p2)
}
  0x40   : > { %487 = dma.hbm_to_vmem [thread:$0]  (!%p742_p7), %s740_s23, 128, %s746_s15, %s147_s25  }
  0x41   : > { %p831_p13 = scmp.ne.s32.totalorder %s825_s18, 0 }
  0x42   : > { %s168_s10 = sand.u32 (!%p831_p13), 1, %s617_s13   ;;  %p832_p11 = scmp.ne.s32.totalorder (!%p831_p13), %s824_s17, 0 }
  0x43   : > { %166 = sbr.rel (%p831_p13) target bundleno = 749 (0x2ed), region = 28  ;;  %s459_s11 = sshll.u32 (!%p831_p13), %s168_s10, 3 }
  0x44   : > { %s169_s12 = scalar_lea.sflag (!%p831_p13), [#allocation3], %s168_s10  ;;  %s172_s19 = scalar_lea.vmem (!%p831_p13), [#allocation2], %s459_s11 }
  0x4a   : > { %604 = dma.done.wait (%p832_p11), %s169_s12, 128  }
  0x4b   : > { %606 = vsyncadd (%p832_p11), %s169_s12, 4294967168  ;;  %p833_p3 = scmp.eq.s32.totalorder %s673_s16, 0 }
  0x4d   : > { %608 = dma.done.wait (%p833_p3), [#allocation5], 64   ;;  %p834_p6 = pmov %p833_p3 }
  0x4e   : > { %v629_v0 = vmov 0.0   ;;  %vm630_vm0 = vmmov 0   ;;  %vm214_vm1 = vcmask 261120   ;;  %v213_v1 = vld [vmem:[#allocation4] sm:$0xf]  ;;  %v211_v3 = vld [vmem:[%s172_s19] sm:$0xff]  ;;  %v265_v12 = vlaneseq }
  0x4f   : > { %610 = vsyncadd (%p834_p6), [#allocation5], 4294967232  ;;  %468 = vmatprep.subr.bf16.mxu0 %v629_v0  ;;  %470 = vmatprep.mubr.msk.bf16.mxu0 %vm630_vm0, %v629_v0  ;;  %v219_v2 = vsel %vm214_vm1, %v213_v1, 0  ;;  %v212_v4 = vpack.c.bf16 %v211_v3, %v211_v3  ;;  %vm307_vm2 = vcmask 56360   ;;  %vm261_vm3 = vcmask 23552   ;;  %s631_s17 = smov 3  }
  0x50   : > { %469 = vmatpush3.bf16.xpose.msra.mxu0 %v219_v2  ;;  %vm284_vm4 = vcmask 39960   ;;  %v266_v13 = vand.u32 127, %v265_v12  ;;  %s632_s18 = smov 5   ;;  %vm334_vm6 = vcmask 7168   ;;  %vm336_vm7 = vcmask 15360   ;;  %s633_s22 = smov 124  }
  0x51   : > { %p202_p7 = scmp.lt.s32.totalorder %s673_s16, 1  ;;  %vm340_vm13 = vcmask 31744  }
  0x53   : > { %s840_s16 = smov (!%p202_p7, %s673_s16), 1 }
  0x54   : > { %s461_s23 = sshll.u32 %s840_s16, 3 }
  0x55   : > { %s205_s15 = scalar_lea.vmem %s819_s2, %s461_s23  ;;  %s209_s26 = scalar_lea.vmem %s820_s3, %s461_s23 }
  0x57   : > { %471 = vmatmul.mubr.msk.bf16.vlgmr.msra.gmra.mrb[0].mxu0 %vm214_vm1, %v212_v4 }
 0x12a   : > { %v255_v5 = vpop.f32.mrb[0].mxu0 }
 0x12b   : > { %v472_v6 = vpop.f32.mrb[1].mxu0  ;;  %v308_v7 = vsel %vm307_vm2, %v255_v5, -inf  ;;  %v262_v8 = vsel %vm261_vm3, %v255_v5, -inf  ;;  %v285_v11 = vsel %vm284_vm4, %v255_v5, -inf }
 0x12c   : > { %309 = vmax.xlane.f32.xlu1 %v308_v7  ;;  %263 = vmax.xlane.f32.xlu0 %v262_v8  ;;  %v258_v9 = vpop.f32.mrb[2].mxu0 }
 0x12d   : > { %v473_v10 = vpop.f32.mrb[3].mxu0 }
 0x130   : > { %286 = vmax.xlane.f32.xlu0 %v285_v11 }
 0x13d   : > { %289 = vrot.lane.b32.xlu1 %v266_v13, %s631_s17 }
 0x146   : > { %312 = vrot.lane.b32.xlu0 %v266_v13, %s632_s18 }
 0x1b9   : > { %v310_v14 = vpop.xlane.xlu1 %309  ;;  %v264_v15 = vpop.xlane.xlu0 %263 }
 0x1ba   : > { %vm267_vm5 = vcmp.eq.f32.partialorder %v255_v5, %v264_v15  ;;  %vm311_vm9 = vcmp.eq.f32.partialorder %v255_v5, %v310_v14 }
 0x1bb   : > { %v268_v16 = vsel %vm267_vm5, %v266_v13, 3 }
 0x1bc   : > { %v269_v17 = vsel %vm261_vm3, %v268_v16, 2147483647 }
 0x1bd   : > { %v287_v18 = vpop.xlane.xlu0 %286  ;;  %v290_v19 = vpop.permute.xlu1 %289  ;;  %v271_v20 = vshra.s32 %v269_v17, 16  ;;  %v270_v33 = vand.u32 65535, %v269_v17 }
 0x1be   : > { %v335_v21 = vsel %vm334_vm6, %v264_v15, %v287_v18  ;;  %vm288_vm8 = vcmp.eq.f32.partialorder %v255_v5, %v287_v18 }
 0x1bf   : > { %v291_v22 = vsel %vm288_vm8, %v290_v19, 2  ;;  %v273_v23 = vcvt.s32.f32 %v271_v20  ;;  %v337_v24 = vsel %vm336_vm7, %v335_v21, %v310_v14  ;;  %v272_v36 = vcvt.s32.f32 %v270_v33 }
 0x1c0   : > { %v292_v25 = vsel %vm284_vm4, %v291_v22, 2147483647 }
 0x1c1   : > { %274 = vmin.xlane.f32.xlu1 %v273_v23  ;;  %v313_v26 = vpop.permute.xlu0 %312  ;;  %v294_v27 = vshra.s32 %v292_v25, 16  ;;  %v293_v34 = vand.u32 65535, %v292_v25 }
 0x1c2   : > { %v314_v28 = vsel %vm311_vm9, %v313_v26, 2 }
 0x1c3   : > { %v315_v29 = vsel %vm307_vm2, %v314_v28, 2147483647  ;;  %v296_v30 = vcvt.s32.f32 %v294_v27  ;;  %v295_v40 = vcvt.s32.f32 %v293_v34 }
 0x1c4   : > { %v317_v31 = vshra.s32 %v315_v29, 16  ;;  %v316_v38 = vand.u32 65535, %v315_v29 }
 0x1c5   : > { %297 = vmin.xlane.f32.xlu0 %v296_v30 }
 0x1c6   : > { %v319_v32 = vcvt.s32.f32 %v317_v31  ;;  %v318_v43 = vcvt.s32.f32 %v316_v38 }
 0x1c8   : > { %320 = vmin.xlane.f32.xlu1 %v319_v32 }
 0x24e   : > { %v275_v35 = vpop.xlane.xlu1 %274 }
 0x24f   : > { %vm276_vm10 = vcmp.eq.f32.partialorder %v273_v23, %v275_v35  ;;  %v281_v47 = vcvt.f32.s32 %v275_v35 }
 0x250   : > { %v277_v37 = vsel %vm276_vm10, %v272_v36, inf }
 0x251   : > { %278 = vmin.xlane.f32.xlu0 %v277_v37  ;;  %v282_v53 = vshll.u32 %v281_v47, 16 }
 0x252   : > { %v298_v39 = vpop.xlane.xlu0 %297 }
 0x253   : > { %vm299_vm11 = vcmp.eq.f32.partialorder %v296_v30, %v298_v39  ;;  %v304_v45 = vcvt.f32.s32 %v298_v39 }
 0x254   : > { %v300_v41 = vsel %vm299_vm11, %v295_v40, inf }
 0x255   : > { %v321_v42 = vpop.xlane.xlu1 %320  ;;  %301 = vmin.xlane.f32.xlu1 %v300_v41  ;;  %v305_v50 = vshll.u32 %v304_v45, 16 }
 0x256   : > { %vm322_vm12 = vcmp.eq.f32.partialorder %v319_v32, %v321_v42  ;;  %v327_v48 = vcvt.f32.s32 %v321_v42 }
 0x257   : > { %v323_v44 = vsel %vm322_vm12, %v318_v43, inf }
 0x258   : > { %324 = vmin.xlane.f32.xlu0 %v323_v44  ;;  %v328_v56 = vshll.u32 %v327_v48, 16 }
 0x266   : > { %331 = vrot.lane.b32.xlu1 %v255_v5, %s633_s22 }
 0x2de   : > { %v279_v46 = vpop.xlane.xlu0 %278 }
 0x2df   : > { %v280_v51 = vcvt.f32.s32 %v279_v46 }
 0x2e1   : > { %v283_v59 = vadd.s32 %v282_v53, %v280_v51 }
 0x2e2   : > { %v302_v49 = vpop.xlane.xlu1 %301 }
 0x2e3   : > { %v303_v52 = vcvt.f32.s32 %v302_v49 }
 0x2e5   : > { %v306_v54 = vadd.s32 %v305_v50, %v303_v52  ;;  %v325_v55 = vpop.xlane.xlu0 %324 }
 0x2e6   : > { %v326_v57 = vcvt.f32.s32 %v325_v55  ;;  %v332_v58 = vpop.permute.xlu1 %331 }
 0x2e7   : > { %v338_v60 = vsel %vm261_vm3, %v337_v24, %v332_v58  ;;  %v342_v63 = vsel %vm334_vm6, %v283_v59, %v306_v54 }
 0x2e8   : > { %v329_v61 = vadd.s32 %v328_v56, %v326_v57  ;;  %v339_v62 = vmul.f32 2.5, %v338_v60 }
 0x2ea   : > { %v343_v0 = vsel %vm336_vm7, %v342_v63, %v329_v61  ;;  %341 = vst.msk [vmem:[%s205_s15] sm:$0xff] %vm340_vm13, %v339_v62 }
 0x2eb   : > { %v344_v1 = vsel %vm261_vm3, %v343_v0, 0 }
 0x2ec   : > { %345 = vst.msk [vmem:[%s209_s26] sm:$0xff] %vm340_vm13, %v344_v1 }
 0x2ed PF: > { %p15_p10 = scmp.ge.s32.totalorder %s692_s21, 4   ;;  %s835_s12 = smov %s617_s13 }
 0x2ee   : > { %s836_s13 = smov %s621_s14  ;;  %s837_s14 = smov %s728_s9 }
 0x2ef   : > { %s838_s15 = smov %s692_s21  ;;  %17 = sbr.rel (!%p15_p10) target bundleno = 4 (0x4), region = 84 }
 0x2f6   :  { %379 = vsyncpa [#allocation3], 1 }
 0x2f7   :  { %381 = vsyncpa [#allocation3 + $0x1], 1 }
 0x2f8   :  { %382 = vsyncpa [#allocation5], 1 }

// kernel: tpu_custom_call.1
= control target key start
LH: loop header
LB: loop body
LE: loop exit
PB: predicated region body
PF: predicated region fallthrough
CT: control target
= control target key end

     0   :  { %9 = vsyncpa [#allocation3], 0  ;;  %s817_s0 = inlined_call_operand.hbm [shape: f32[16,32], index: 0, kind: input, shape index: {}]   ;;  %s818_s1 = inlined_call_operand.hbm [shape: bf16[8,32], index: 1, kind: input, shape index: {}]   ;;  %s819_s2 = inlined_call_operand.vmem [shape: f32[16,4], index: 2, kind: output, shape index: {0}]   ;;  %s820_s3 = inlined_call_operand.vmem [shape: s32[16,4], index: 3, kind: output, shape index: {1}]  }
   0x1   :  { %11 = vsyncpa [#allocation3 + $0x1], 0 }
   0x2   :  { %12 = vsyncpa [#allocation5], 0  ;;  %s654_s12 = smov 0   ;;  %s656_s13 = smov 0  }
   0x3   :  { %s658_s14 = smov 0   ;;  %s660_s15 = smov 0  }
   0x4 LB: > { %s673_s16 = sadd.s32 4294967295, %s625_s15   ;;  %p38_p0 = scmp.ne.s32.totalorder %s617_s13, %s613_s12  ;;  %s625_s15 = sphi %s660_s15, %s838_s15   ;;  %s621_s14 = sphi %s658_s14, %s837_s14   ;;  %s617_s13 = sphi %s656_s13, %s836_s13   ;;  %s613_s12 = sphi %s654_s12, %s835_s12  }
   0x5   : > { %p821_p1 = scmp.eq.s32.totalorder %s673_s16, 0  ;;  %p453_p2 = scmp.ge.s32.totalorder %s625_s15, 1 }
   0x6   : > { %p122_p3 = scmp.lt.s32.totalorder %s625_s15, 3  ;;  %s627_s19 = smov [#allocation4]  }
   0x7   : > { %p681_p4 = por %p821_p1, %p38_p0  ;;  %s135_s20 = sshll.u32 %s627_s19, 4  ;;  %s136_s20 = int_to_ptr.vmem [resolvable:$true] %s135_s20 }
   0x8   : > { %p685_p5 = pnand %p453_p2, %p122_p3  ;;  %s692_s21 = sadd.s32 1, %s625_s15  }
   0x9   : > { %s824_s17 = scalar_select %p681_p4, 1, 0 }
   0xa   : > { %s825_s18 = scalar_select %p685_p5, 1, 0 }
   0xb   : > { %p480_p6 = pneg %p685_p5  ;;  %s22_s23 = ssub.s32 %s625_s15, %s692_s21 }
   0xc   : > { %p702_p8 = scmp.eq.s32.totalorder %s22_s23, 0  ;;  %s25_s25 = sadd.s32 1, %s621_s14 }
   0xd   : > { %p696_p7 = pnand %p480_p6, %p821_p1  ;;  %s529_s28 = scalar_lea.hbm %s818_s1, 64 }
   0xe   : > { %s827_s24 = scalar_select %p702_p8, 1, 0 }
   0xf   : > { %p530_p10 = scmp.ne.s32.totalorder %s818_s1, %s529_s28  ;;  %p531_p11 = pneg %p696_p7 }
  0x10   : > { %p536_p0 = scmp.lt.u32.totalorder %s529_s28, %s818_s1 }
  0x11   : > { %p532_p12 = pnand %p531_p11, %p530_p10 }
  0x13   : > { %p533_p13 = pneg %p532_p12 }
  0x15   : > { %p538_p2 = pnand %p536_p0, %p533_p13 }
  0x17   : > { %541 = shalt.err (!%p538_p2)
}
  0x18   : > { %s542_s6 = scalar_lea.vmem %s136_s20, 64  ;;  %p550_p9 = scmp.lt.s32.totalorder %s136_s20, %s136_s20 }
  0x19   : > { %p543_p3 = scmp.ne.s32.totalorder %s136_s20, %s542_s6  ;;  %p551_p4 = scmp.lt.s32.totalorder %s542_s6, %s542_s6 }
  0x1b   : > { %p545_p6 = pnand %p543_p3, %p531_p11  ;;  %p552_p5 = por %p551_p4, %p550_p9 }
  0x1d   : > { %p546_p1 = pneg %p545_p6 }
  0x1f   : > { %p553_p8 = pnand %p552_p5, %p546_p1 }
  0x21   : > { %556 = shalt.err (!%p553_p8)
}
  0x22   : > { %483 = dma.hbm_to_vmem [thread:$0]  (!%p696_p7), %s818_s1, 64, %s136_s20, [#allocation5]  }
  0x23   : > { %p828_p10 = scmp.ne.s32.totalorder %s827_s24, 0  ;;  %p33_p4 = scmp.eq.s32.totalorder %s625_s15, 0 }
  0x24   : > { %p489_p1 = scmp.lt.s32.totalorder %s625_s15, 2  ;;  %s146_s10 = sand.u32 1, %s621_s14  }
  0x25   : > { %s728_s9 = scalar_select %p828_p10, %s621_s14, %s25_s25  }
  0x26   : > { %s457_s11 = sshll.u32 %s625_s15, 7  ;;  %p829_p5 = scmp.ne.s32.totalorder %s621_s14, %s617_s13 }
  0x27   : > { %s456_s12 = sshll.u32 %s146_s10, 3  ;;  %s740_s23 = scalar_lea.hbm %s817_s0, %s457_s11 }
  0x28   : > { %p34_p8 = por %p33_p4, %p829_p5  ;;  %s150_s24 = scalar_lea.vmem [#allocation2], %s456_s12 }
  0x29   : > { %s157_s15 = sshll.u32 %s150_s24, 4  ;;  %s147_s25 = scalar_lea.sflag [#allocation3], %s146_s10  ;;  %s746_s15 = int_to_ptr.vmem [resolvable:$true] %s157_s15 }
  0x2a   : > { %p742_p7 = pnand %p489_p1, %p34_p8  ;;  %s557_s26 = scalar_lea.hbm %s740_s23, 128 }
  0x2b   : > { %p558_p9 = scmp.ne.s32.totalorder %s740_s23, %s557_s26  ;;  %s562_s29 = scalar_lea.hbm %s817_s0, 256 }
  0x2c   : > { %p559_p11 = pneg %p742_p7  ;;  %p563_p0 = scmp.lt.u32.totalorder %s740_s23, %s817_s0 }
  0x2d   : > { %p564_p2 = scmp.lt.u32.totalorder %s562_s29, %s557_s26  ;;  %p566_p6 = scmp.lt.u32.totalorder %s557_s26, %s740_s23 }
  0x2e   : > { %p560_p12 = pnand %p559_p11, %p558_p9 }
  0x2f   : > { %p565_p3 = por %p564_p2, %p563_p0 }
  0x30   : > { %p561_p13 = pneg %p560_p12 }
  0x31   : > { %p567_p10 = por %p566_p6, %p565_p3 }
  0x33   : > { %p568_p4 = pnand %p567_p10, %p561_p13 }
  0x35   : > { %571 = shalt.err (!%p568_p4)
}
  0x36   : > { %s572_s5 = scalar_lea.vmem %s746_s15, 128  ;;  %s628_s6 = smov [#allocation2]  }
  0x37   : > { %p573_p1 = scmp.ne.s32.totalorder %s746_s15, %s572_s5  ;;  %s577_s7 = sshll.u32 %s628_s6, 4  ;;  %s578_s7 = int_to_ptr.vmem [resolvable:$false] %s577_s7 }
  0x38   : > { %s579_s8 = scalar_lea.vmem %s578_s7, 256  ;;  %p580_p9 = scmp.lt.s32.totalorder %s746_s15, %s578_s7 }
  0x39   : > { %p575_p5 = pnand %p573_p1, %p559_p11  ;;  %p581_p12 = scmp.lt.s32.totalorder %s579_s8, %s572_s5 }
  0x3b   : > { %p576_p8 = pneg %p575_p5  ;;  %p582_p0 = por %p581_p12, %p580_p9 }
  0x3d   : > { %p583_p2 = pnand %p582_p0, %p576_p8 }
  0x3f   : > { %586 = shalt.err (!%p583_p2)
}
  0x40   : > { %487 = dma.hbm_to_vmem [thread:$0]  (!%p742_p7), %s740_s23, 128, %s746_s15, %s147_s25  }
  0x41   : > { %p831_p13 = scmp.ne.s32.totalorder %s825_s18, 0 }
  0x42   : > { %s168_s10 = sand.u32 (!%p831_p13), 1, %s617_s13   ;;  %p832_p11 = scmp.ne.s32.totalorder (!%p831_p13), %s824_s17, 0 }
  0x43   : > { %166 = sbr.rel (%p831_p13) target bundleno = 749 (0x2ed), region = 28  ;;  %s459_s11 = sshll.u32 (!%p831_p13), %s168_s10, 3 }
  0x44   : > { %s169_s12 = scalar_lea.sflag (!%p831_p13), [#allocation3], %s168_s10  ;;  %s172_s19 = scalar_lea.vmem (!%p831_p13), [#allocation2], %s459_s11 }
  0x4a   : > { %604 = dma.done.wait (%p832_p11), %s169_s12, 128  }
  0x4b   : > { %606 = vsyncadd (%p832_p11), %s169_s12, 4294967168  ;;  %p833_p3 = scmp.eq.s32.totalorder %s673_s16, 0 }
  0x4d   : > { %608 = dma.done.wait (%p833_p3), [#allocation5], 64   ;;  %p834_p6 = pmov %p833_p3 }
  0x4e   : > { %v629_v0 = vmov 0.0   ;;  %vm630_vm0 = vmmov 0   ;;  %vm214_vm1 = vcmask 261120   ;;  %v213_v1 = vld [vmem:[#allocation4] sm:$0xf]  ;;  %v211_v3 = vld [vmem:[%s172_s19] sm:$0xff]  ;;  %v265_v12 = vlaneseq }
  0x4f   : > { %610 = vsyncadd (%p834_p6), [#allocation5], 4294967232  ;;  %468 = vmatprep.subr.bf16.mxu0 %v629_v0  ;;  %470 = vmatprep.mubr.msk.bf16.mxu0 %vm630_vm0, %v629_v0  ;;  %v219_v2 = vsel %vm214_vm1, %v213_v1, 0  ;;  %v212_v4 = vpack.c.bf16 %v211_v3, %v211_v3  ;;  %vm307_vm2 = vcmask 56360   ;;  %vm261_vm3 = vcmask 23552   ;;  %s631_s17 = smov 3  }
  0x50   : > { %469 = vmatpush3.bf16.xpose.msra.mxu0 %v219_v2  ;;  %vm284_vm4 = vcmask 39960   ;;  %v266_v13 = vand.u32 127, %v265_v12  ;;  %s632_s18 = smov 5   ;;  %vm334_vm6 = vcmask 7168   ;;  %vm336_vm7 = vcmask 15360   ;;  %s633_s22 = smov 124  }
  0x51   : > { %p202_p7 = scmp.lt.s32.totalorder %s673_s16, 1  ;;  %vm340_vm13 = vcmask 31744  }
  0x53   : > { %s840_s16 = smov (!%p202_p7, %s673_s16), 1 }
  0x54   : > { %s461_s23 = sshll.u32 %s840_s16, 3 }
  0x55   : > { %s205_s15 = scalar_lea.vmem %s819_s2, %s461_s23  ;;  %s209_s26 = scalar_lea.vmem %s820_s3, %s461_s23 }
  0x57   : > { %471 = vmatmul.mubr.msk.bf16.vlgmr.msra.gmra.mrb[0].mxu0 %vm214_vm1, %v212_v4 }
 0x12a   : > { %v255_v5 = vpop.f32.mrb[0].mxu0 }
 0x12b   : > { %v472_v6 = vpop.f32.mrb[1].mxu0  ;;  %v308_v7 = vsel %vm307_vm2, %v255_v5, -inf  ;;  %v262_v8 = vsel %vm261_vm3, %v255_v5, -inf  ;;  %v285_v11 = vsel %vm284_vm4, %v255_v5, -inf }
 0x12c   : > { %309 = vmax.xlane.f32.xlu1 %v308_v7  ;;  %263 = vmax.xlane.f32.xlu0 %v262_v8  ;;  %v258_v9 = vpop.f32.mrb[2].mxu0 }
 0x12d   : > { %v473_v10 = vpop.f32.mrb[3].mxu0 }
 0x130   : > { %286 = vmax.xlane.f32.xlu0 %v285_v11 }
 0x13d   : > { %289 = vrot.lane.b32.xlu1 %v266_v13, %s631_s17 }
 0x146   : > { %312 = vrot.lane.b32.xlu0 %v266_v13, %s632_s18 }
 0x1b9   : > { %v310_v14 = vpop.xlane.xlu1 %309  ;;  %v264_v15 = vpop.xlane.xlu0 %263 }
 0x1ba   : > { %vm267_vm5 = vcmp.eq.f32.partialorder %v255_v5, %v264_v15  ;;  %vm311_vm9 = vcmp.eq.f32.partialorder %v255_v5, %v310_v14 }
 0x1bb   : > { %v268_v16 = vsel %vm267_vm5, %v266_v13, 3 }
 0x1bc   : > { %v269_v17 = vsel %vm261_vm3, %v268_v16, 2147483647 }
 0x1bd   : > { %v287_v18 = vpop.xlane.xlu0 %286  ;;  %v290_v19 = vpop.permute.xlu1 %289  ;;  %v271_v20 = vshra.s32 %v269_v17, 16  ;;  %v270_v33 = vand.u32 65535, %v269_v17 }
 0x1be   : > { %v335_v21 = vsel %vm334_vm6, %v264_v15, %v287_v18  ;;  %vm288_vm8 = vcmp.eq.f32.partialorder %v255_v5, %v287_v18 }
 0x1bf   : > { %v291_v22 = vsel %vm288_vm8, %v290_v19, 2  ;;  %v273_v23 = vcvt.s32.f32 %v271_v20  ;;  %v337_v24 = vsel %vm336_vm7, %v335_v21, %v310_v14  ;;  %v272_v36 = vcvt.s32.f32 %v270_v33 }
 0x1c0   : > { %v292_v25 = vsel %vm284_vm4, %v291_v22, 2147483647 }
 0x1c1   : > { %274 = vmin.xlane.f32.xlu1 %v273_v23  ;;  %v313_v26 = vpop.permute.xlu0 %312  ;;  %v294_v27 = vshra.s32 %v292_v25, 16  ;;  %v293_v34 = vand.u32 65535, %v292_v25 }
 0x1c2   : > { %v314_v28 = vsel %vm311_vm9, %v313_v26, 2 }
 0x1c3   : > { %v315_v29 = vsel %vm307_vm2, %v314_v28, 2147483647  ;;  %v296_v30 = vcvt.s32.f32 %v294_v27  ;;  %v295_v40 = vcvt.s32.f32 %v293_v34 }
 0x1c4   : > { %v317_v31 = vshra.s32 %v315_v29, 16  ;;  %v316_v38 = vand.u32 65535, %v315_v29 }
 0x1c5   : > { %297 = vmin.xlane.f32.xlu0 %v296_v30 }
 0x1c6   : > { %v319_v32 = vcvt.s32.f32 %v317_v31  ;;  %v318_v43 = vcvt.s32.f32 %v316_v38 }
 0x1c8   : > { %320 = vmin.xlane.f32.xlu1 %v319_v32 }
 0x24e   : > { %v275_v35 = vpop.xlane.xlu1 %274 }
 0x24f   : > { %vm276_vm10 = vcmp.eq.f32.partialorder %v273_v23, %v275_v35  ;;  %v281_v47 = vcvt.f32.s32 %v275_v35 }
 0x250   : > { %v277_v37 = vsel %vm276_vm10, %v272_v36, inf }
 0x251   : > { %278 = vmin.xlane.f32.xlu0 %v277_v37  ;;  %v282_v53 = vshll.u32 %v281_v47, 16 }
 0x252   : > { %v298_v39 = vpop.xlane.xlu0 %297 }
 0x253   : > { %vm299_vm11 = vcmp.eq.f32.partialorder %v296_v30, %v298_v39  ;;  %v304_v45 = vcvt.f32.s32 %v298_v39 }
 0x254   : > { %v300_v41 = vsel %vm299_vm11, %v295_v40, inf }
 0x255   : > { %v321_v42 = vpop.xlane.xlu1 %320  ;;  %301 = vmin.xlane.f32.xlu1 %v300_v41  ;;  %v305_v50 = vshll.u32 %v304_v45, 16 }
 0x256   : > { %vm322_vm12 = vcmp.eq.f32.partialorder %v319_v32, %v321_v42  ;;  %v327_v48 = vcvt.f32.s32 %v321_v42 }
 0x257   : > { %v323_v44 = vsel %vm322_vm12, %v318_v43, inf }
 0x258   : > { %324 = vmin.xlane.f32.xlu0 %v323_v44  ;;  %v328_v56 = vshll.u32 %v327_v48, 16 }
 0x266   : > { %331 = vrot.lane.b32.xlu1 %v255_v5, %s633_s22 }
 0x2de   : > { %v279_v46 = vpop.xlane.xlu0 %278 }
 0x2df   : > { %v280_v51 = vcvt.f32.s32 %v279_v46 }
 0x2e1   : > { %v283_v59 = vadd.s32 %v282_v53, %v280_v51 }
 0x2e2   : > { %v302_v49 = vpop.xlane.xlu1 %301 }
 0x2e3   : > { %v303_v52 = vcvt.f32.s32 %v302_v49 }
 0x2e5   : > { %v306_v54 = vadd.s32 %v305_v50, %v303_v52  ;;  %v325_v55 = vpop.xlane.xlu0 %324 }
 0x2e6   : > { %v326_v57 = vcvt.f32.s32 %v325_v55  ;;  %v332_v58 = vpop.permute.xlu1 %331 }
 0x2e7   : > { %v338_v60 = vsel %vm261_vm3, %v337_v24, %v332_v58  ;;  %v342_v63 = vsel %vm334_vm6, %v283_v59, %v306_v54 }
 0x2e8   : > { %v329_v61 = vadd.s32 %v328_v56, %v326_v57  ;;  %v339_v62 = vmul.f32 2.5, %v338_v60 }
 0x2ea   : > { %v343_v0 = vsel %vm336_vm7, %v342_v63, %v329_v61  ;;  %341 = vst.msk [vmem:[%s205_s15] sm:$0xff] %vm340_vm13, %v339_v62 }
 0x2eb   : > { %v344_v1 = vsel %vm261_vm3, %v343_v0, 0 }
 0x2ec   : > { %345 = vst.msk [vmem:[%s209_s26] sm:$0xff] %vm340_vm13, %v344_v1 }
 0x2ed PF: > { %p15_p10 = scmp.ge.s32.totalorder %s692_s21, 4   ;;  %s835_s12 = smov %s617_s13 }
 0x2ee   : > { %s836_s13 = smov %s621_s14  ;;  %s837_s14 = smov %s728_s9 }
 0x2ef   : > { %s838_s15 = smov %s692_s21  ;;  %17 = sbr.rel (!%p15_p10) target bundleno = 4 (0x4), region = 84 }
 0x2f6   :  { %379 = vsyncpa [#allocation3], 1 }
 0x2f7   :  { %381 = vsyncpa [#allocation3 + $0x1], 1 }
 0x2f8   :  { %382 = vsyncpa [#allocation5], 1 }

</bundles_post_ra>
